<compile_context>
chip_gen: v6e
topology: v6e:2x2x1
jax: 0.10.0
libtpu: 0.0.40
codegen_flags: <defaults>
</compile_context>

<pallas_src>
import math
import functools

import jax
import jax.numpy as jnp
from jax.experimental import pallas as pl
from jax.experimental.pallas import tpu as pltpu


_LANES = 128
_SUBLANES = 8
_EDGE_GRANULE = _LANES * _SUBLANES  # 1024 edges == one dense f32 (8,128) vreg


def _round_up(a: int, b: int) -> int:
    return ((a + b - 1) // b) * b


def _static_int_pow(v, n: int):
    """v ** n for static integer n >= 1 via exponentiation-by-squaring."""
    result = None
    base = v
    while n > 0:
        if n & 1:
            result = base if result is None else result * base
        n >>= 1
        if n:
            base = base * base
    return result


def _radial_embedding_kernel(x_ref, o_ref, *, r_max: float, num_bessel: int,
                             p: int, strip_rows: int, approx_recip: bool):
    # x_ref: (TS, 128)               dense tile of edge lengths
    # o_ref: (num_bessel, TS, 128)   output (bessel index on leading axis)
    ts = x_ref.shape[0]
    n_strips = ts // strip_rows

    pf = float(p)
    c1 = (pf + 1.0) * (pf + 2.0) / 2.0
    c2 = pf * (pf + 2.0)
    c3 = pf * (pf + 1.0) / 2.0
    prefactor = math.sqrt(2.0 / r_max)
    inv_r_max = 1.0 / r_max
    w1 = math.pi / r_max

    # Strip-mine over sublane rows so recurrence state stays in a few vregs
    # (no spills at large tiles); the HBM<->VMEM block stays big.
    @pl.loop(0, n_strips)
    def _(s):
        r0 = pl.multiple_of(s * strip_rows, strip_rows)
        x = x_ref[pl.ds(r0, strip_rows), :]              # f32 (strip_rows, 128)

        # ---- polynomial cutoff (Horner form) ------------------------------
        r = x * inv_r_max
        r_p = _static_int_pow(r, p)
        envelope = 1.0 - r_p * (c1 - r * (c2 - c3 * r))
        cutoff = jnp.where(x < r_max, envelope, 0.0)

        # ---- combined per-edge scale: sqrt(2/r_max) * cutoff / x -----------
        scale = (prefactor * cutoff) * pl.reciprocal(x, approx=approx_recip)

        # ---- sin(k*t) via Chebyshev recurrence: 2 transcendentals / edge ---
        t = w1 * x
        sin_t = jnp.sin(t)
        cos_t = jnp.cos(t)
        two_cos_t = cos_t + cos_t

        s_prev = jnp.zeros_like(sin_t)   # sin(0 * t)
        s_cur = sin_t                    # sin(1 * t)
        for k in range(num_bessel):
            o_ref[k, pl.ds(r0, strip_rows), :] = (s_cur * scale).astype(o_ref.dtype)
            if k + 1 < num_bessel:
                s_next = two_cos_t * s_cur - s_prev
                s_prev, s_cur = s_cur, s_next


def radial_embedding_block(edge_lengths: jax.Array,
                           *,
                           r_max: float,
                           num_bessel: int,
                           num_polynomial_cutoff: int,
                           edges_per_tile: int = 65536,
                           out_dtype=jnp.float32,
                           layout: str = "edge_major",
                           approx_reciprocal: bool = True) -> jax.Array:
    """Pallas implementation of RadialEmbeddingBlock.forward.

    edge_lengths: [n_edges, 1] float32
    layout="edge_major"   -> [n_edges, num_bessel]  (module semantics)
    layout="bessel_major" -> [num_bessel, n_edges]  (no wrapper transpose;
                             preferred when the consumer contracts over the
                             bessel axis, e.g. a linear layer)
    out_dtype=jnp.bfloat16 halves HBM writeback; math stays f32.
    """
    assert edge_lengths.ndim == 2 and edge_lengths.shape[-1] == 1
    assert layout in ("edge_major", "bessel_major")
    n_edges = edge_lengths.shape[0]
    assert n_edges > 0

    # Edge-tile size: multiple of 1024 edges; clamped so (a) tiny inputs do
    # not over-pad and (b) medium inputs still produce >= 2 grid steps so the
    # "parallel" edge axis shards across v7x's two TensorCores.
    tile_req = max(_EDGE_GRANULE, (edges_per_tile // _EDGE_GRANULE) * _EDGE_GRANULE)
    n_ceil = _round_up(n_edges, _EDGE_GRANULE)
    if n_ceil >= 2 * _EDGE_GRANULE:
        half = _round_up((n_ceil + 1) // 2, _EDGE_GRANULE)
        tile = min(tile_req, half)
    else:
        tile = _EDGE_GRANULE
    n_pad = _round_up(n_edges, tile)
    ts = tile // _LANES                     # sublane rows per tile

    # Strip size for the in-kernel recurrence loop (must divide ts; ts is a
    # multiple of 8 by construction).
    strip_rows = _SUBLANES
    for cand in (32, 16):
        if ts % cand == 0:
            strip_rows = cand
            break

    # Pad with r_max: cutoff mask zeroes the padded lanes, no div-by-zero.
    # TODO(synk): callers that can emit edge lengths already padded/reshaped to
    # (n_pad//128, 128) should do so to skip this extra HBM read+write.
    x_flat = edge_lengths.reshape(-1).astype(jnp.float32)
    if n_pad != n_edges:
        x_flat = jnp.pad(x_flat, (0, n_pad - n_edges),
                         constant_values=float(r_max))
    x2d = x_flat.reshape(n_pad // _LANES, _LANES)

    kernel = functools.partial(
        _radial_embedding_kernel,
        r_max=float(r_max),
        num_bessel=int(num_bessel),
        p=int(num_polynomial_cutoff),
        strip_rows=int(strip_rows),
        approx_recip=bool(approx_reciprocal),
    )

    out_itemsize = jnp.dtype(out_dtype).itemsize
    in_block_bytes = tile * 4
    out_block_bytes = num_bessel * tile * out_itemsize
    vmem_needed = 2 * (in_block_bytes + out_block_bytes)   # double-buffered
    vmem_limit = int(max(vmem_needed + (2 << 20), 16 << 20))

    cost = pl.CostEstimate(
        flops=int(n_pad * (3 * num_bessel + 16)),
        transcendentals=int(3 * n_pad),                    # sin, cos, recip / edge
        bytes_accessed=int(4 * n_pad + out_itemsize * n_pad * num_bessel),
    )

    raw = pl.pallas_call(
        kernel,
        out_shape=jax.ShapeDtypeStruct(
            (num_bessel, n_pad // _LANES, _LANES), out_dtype),
        grid_spec=pltpu.PrefetchScalarGridSpec(
            num_scalar_prefetch=0,
            grid=(n_pad // tile,),
            in_specs=[pl.BlockSpec((ts, _LANES), lambda i: (i, 0))],
            out_specs=pl.BlockSpec((num_bessel, ts, _LANES), lambda i: (0, i, 0)),
        ),
        compiler_params=pltpu.CompilerParams(
            dimension_semantics=("parallel",),
            vmem_limit_bytes=vmem_limit,
        ),
        cost_estimate=cost,
    )(x2d)

    out_bm = raw.reshape(num_bessel, n_pad)                 # contiguous reshape
    if layout == "bessel_major":
        return out_bm[:, :n_edges]
    # Module-semantics layout: transpose is wrapper-side layout plumbing on
    # the (possibly bf16) kernel output; prefer layout="bessel_major" + fused
    # contraction downstream to avoid it entirely.
    return out_bm[:, :n_edges].T


def _reference(edge_lengths, *, r_max, num_bessel, p):
    # Pure-JAX reference (faithful to the PyTorch module).
    w = (math.pi / r_max) * jnp.linspace(1.0, float(num_bessel), num_bessel,
                                         dtype=jnp.float32)
    pref = math.sqrt(2.0 / r_max)
    bessel = pref * jnp.sin(edge_lengths * w) / edge_lengths
    pf = float(p)
    r = edge_lengths / r_max
    env = (1.0
           - (pf + 1.0) * (pf + 2.0) / 2.0 * r ** p
           + pf * (pf + 2.0) * r ** (p + 1)
           - pf * (pf + 1.0) / 2.0 * r ** (p + 2))
    cutoff = env * (edge_lengths < r_max)
    return bessel * cutoff


if __name__ == "__main__":
    r_max = 5.0
    num_polynomial_cutoff = 6

    key = jax.random.PRNGKey(0)
    k1, k2 = jax.random.split(key)

    # Test 1: strict math check (exact reciprocal, f32 output). 2500 edges ->
    # tile clamp gives a 2-step grid (exercises pipelining, megacore sharding
    # and r_max-padded tail masking).
    n_edges, num_bessel = 2500, 8
    edge_lengths = jax.random.uniform(
        k1, (n_edges, 1), dtype=jnp.float32, minval=0.1, maxval=6.0)
    out = radial_embedding_block(
        edge_lengths, r_max=r_max, num_bessel=num_bessel,
        num_polynomial_cutoff=num_polynomial_cutoff,
        out_dtype=jnp.float32, approx_reciprocal=False)
    out = jax.block_until_ready(out)
    ref = _reference(edge_lengths, r_max=r_max, num_bessel=num_bessel,
                     p=num_polynomial_cutoff)
    assert out.shape == (n_edges, num_bessel)
    assert jnp.allclose(out, ref, atol=1e-4, rtol=1e-4), "mismatch vs reference (test 1)"

    # Test 2: default fast path (approx reciprocal + bf16 writeback), tiny
    # single-tile input with a non-power-of-two basis count.
    n_edges2, num_bessel2 = 37, 10
    edge_lengths2 = jax.random.uniform(
        k2, (n_edges2, 1), dtype=jnp.float32, minval=0.1, maxval=6.0)
    out2 = radial_embedding_block(
        edge_lengths2, r_max=r_max, num_bessel=num_bessel2,
        num_polynomial_cutoff=num_polynomial_cutoff,
        out_dtype=jnp.bfloat16)
    out2 = jax.block_until_ready(out2)
    ref2 = _reference(edge_lengths2, r_max=r_max, num_bessel=num_bessel2,
                      p=num_polynomial_cutoff)
    assert out2.shape == (n_edges2, num_bessel2)
    assert jnp.allclose(out2.astype(jnp.float32), ref2,
                        atol=5e-2, rtol=2e-2), "mismatch vs reference (test 2)"

    # Test 3: bessel_major layout (no wrapper transpose) matches the module
    # semantics after a cheap transpose on the caller side.
    out3 = radial_embedding_block(
        edge_lengths2, r_max=r_max, num_bessel=num_bessel2,
        num_polynomial_cutoff=num_polynomial_cutoff,
        layout="bessel_major", out_dtype=jnp.float32, approx_reciprocal=False)
    out3 = jax.block_until_ready(out3)
    assert out3.shape == (num_bessel2, n_edges2)
    assert jnp.allclose(out3.T, ref2, atol=1e-4, rtol=1e-4), "mismatch vs reference (test 3)"

    print("KERNEL_OK")
</pallas_src>

<mosaic_0001>
module attributes {stable_mosaic.version = 11 : i64} {
  func.func @_radial_embedding_kernel(%arg0: i32, %arg1: memref<16x128xf32, #tpu.memory_space<vmem>>, %arg2: memref<8x16x128xf32, #tpu.memory_space<vmem>>) attributes {dimension_semantics = [#tpu.dimension_semantics<parallel>], iteration_bounds = array<i64: 2>, scalar_prefetch = 0 : i64, scratch_operands = 0 : i64, tpu.core_type = #tpu.core_type<tc>, window_params = [{transform_indices = @transform_0, window_bounds = array<i64: 16, 128>}, {transform_indices = @transform_1, window_bounds = array<i64: 8, 16, 128>}]} {
    %c0_i32 = arith.constant 0 : i32
    %c1_i32 = arith.constant 1 : i32
    %0 = arith.muli %c0_i32, %c1_i32 : i32
    %c0_i32_0 = arith.constant 0 : i32
    %1 = arith.addi %c0_i32_0, %0 : i32
    %c16_i32 = arith.constant 16 : i32
    %2 = arith.muli %1, %c16_i32 : i32
    %3 = tpu.assume_multiple %2, 16 : i32
    %4 = arith.index_cast %3 : i32 to index
    %c0 = arith.constant 0 : index
    %5 = vector.load %arg1[%4, %c0] : memref<16x128xf32, #tpu.memory_space<vmem>>, vector<16x128xf32>
    %cst = arith.constant 2.000000e-01 : f32
    %6 = vector.broadcast %cst : f32 to vector<16x128xf32>
    %7 = arith.mulf %5, %6 : vector<16x128xf32>
    %8 = arith.mulf %7, %7 : vector<16x128xf32>
    %9 = arith.mulf %8, %8 : vector<16x128xf32>
    %10 = arith.mulf %8, %9 : vector<16x128xf32>
    %cst_1 = arith.constant 2.100000e+01 : f32
    %11 = vector.broadcast %cst_1 : f32 to vector<16x128xf32>
    %12 = arith.mulf %11, %7 : vector<16x128xf32>
    %cst_2 = arith.constant 4.800000e+01 : f32
    %13 = vector.broadcast %cst_2 : f32 to vector<16x128xf32>
    %14 = arith.subf %13, %12 : vector<16x128xf32>
    %15 = arith.mulf %7, %14 : vector<16x128xf32>
    %cst_3 = arith.constant 2.800000e+01 : f32
    %16 = vector.broadcast %cst_3 : f32 to vector<16x128xf32>
    %17 = arith.subf %16, %15 : vector<16x128xf32>
    %18 = arith.mulf %10, %17 : vector<16x128xf32>
    %cst_4 = arith.constant 1.000000e+00 : f32
    %19 = vector.broadcast %cst_4 : f32 to vector<16x128xf32>
    %20 = arith.subf %19, %18 : vector<16x128xf32>
    %cst_5 = arith.constant 5.000000e+00 : f32
    %21 = vector.broadcast %cst_5 : f32 to vector<16x128xf32>
    %22 = arith.cmpf olt, %5, %21 : vector<16x128xf32>
    %cst_6 = arith.constant 0.000000e+00 : f32
    %23 = vector.broadcast %cst_6 : f32 to vector<16x128xf32>
    %24 = arith.select %22, %20, %23 : vector<16x128xi1>, vector<16x128xf32>
    %cst_7 = arith.constant 0.632455527 : f32
    %25 = vector.broadcast %cst_7 : f32 to vector<16x128xf32>
    %26 = arith.mulf %25, %24 : vector<16x128xf32>
    %27 = tpu.reciprocal %5 : vector<16x128xf32> -> vector<16x128xf32>
    %28 = arith.mulf %26, %27 : vector<16x128xf32>
    %cst_8 = arith.constant 0.628318548 : f32
    %29 = vector.broadcast %cst_8 : f32 to vector<16x128xf32>
    %30 = arith.mulf %29, %5 : vector<16x128xf32>
    %31 = math.sin %30 : vector<16x128xf32>
    %32 = math.cos %30 : vector<16x128xf32>
    %33 = arith.addf %32, %32 : vector<16x128xf32>
    %cst_9 = arith.constant 0.000000e+00 : f32
    %34 = vector.broadcast %cst_9 : f32 to vector<16x128xf32>
    %35 = arith.mulf %31, %28 : vector<16x128xf32>
    %c0_10 = arith.constant 0 : index
    %36 = arith.index_cast %3 : i32 to index
    %c0_11 = arith.constant 0 : index
    %37 = vector.load %arg2[%c0_10, %36, %c0_11] : memref<8x16x128xf32, #tpu.memory_space<vmem>>, vector<1x16x128xf32>
    %38 = vector.shape_cast %37 : vector<1x16x128xf32> to vector<16x128xf32>
    %39 = vector.shape_cast %35 : vector<16x128xf32> to vector<1x16x128xf32>
    tpu.vector_store %arg2[%c0_10, %36, %c0_11], %39 {strides = array<i32>} : memref<8x16x128xf32, #tpu.memory_space<vmem>>, vector<1x16x128xf32>,
    %40 = arith.mulf %33, %31 : vector<16x128xf32>
    %41 = arith.subf %40, %34 : vector<16x128xf32>
    %42 = arith.mulf %41, %28 : vector<16x128xf32>
    %c1 = arith.constant 1 : index
    %43 = arith.index_cast %3 : i32 to index
    %c0_12 = arith.constant 0 : index
    %44 = vector.load %arg2[%c1, %43, %c0_12] : memref<8x16x128xf32, #tpu.memory_space<vmem>>, vector<1x16x128xf32>
    %45 = vector.shape_cast %44 : vector<1x16x128xf32> to vector<16x128xf32>
    %46 = vector.shape_cast %42 : vector<16x128xf32> to vector<1x16x128xf32>
    tpu.vector_store %arg2[%c1, %43, %c0_12], %46 {strides = array<i32>} : memref<8x16x128xf32, #tpu.memory_space<vmem>>, vector<1x16x128xf32>,
    %47 = arith.mulf %33, %41 : vector<16x128xf32>
    %48 = arith.subf %47, %31 : vector<16x128xf32>
    %49 = arith.mulf %48, %28 : vector<16x128xf32>
    %c2 = arith.constant 2 : index
    %50 = arith.index_cast %3 : i32 to index
    %c0_13 = arith.constant 0 : index
    %51 = vector.load %arg2[%c2, %50, %c0_13] : memref<8x16x128xf32, #tpu.memory_space<vmem>>, vector<1x16x128xf32>
    %52 = vector.shape_cast %51 : vector<1x16x128xf32> to vector<16x128xf32>
    %53 = vector.shape_cast %49 : vector<16x128xf32> to vector<1x16x128xf32>
    tpu.vector_store %arg2[%c2, %50, %c0_13], %53 {strides = array<i32>} : memref<8x16x128xf32, #tpu.memory_space<vmem>>, vector<1x16x128xf32>,
    %54 = arith.mulf %33, %48 : vector<16x128xf32>
    %55 = arith.subf %54, %41 : vector<16x128xf32>
    %56 = arith.mulf %55, %28 : vector<16x128xf32>
    %c3 = arith.constant 3 : index
    %57 = arith.index_cast %3 : i32 to index
    %c0_14 = arith.constant 0 : index
    %58 = vector.load %arg2[%c3, %57, %c0_14] : memref<8x16x128xf32, #tpu.memory_space<vmem>>, vector<1x16x128xf32>
    %59 = vector.shape_cast %58 : vector<1x16x128xf32> to vector<16x128xf32>
    %60 = vector.shape_cast %56 : vector<16x128xf32> to vector<1x16x128xf32>
    tpu.vector_store %arg2[%c3, %57, %c0_14], %60 {strides = array<i32>} : memref<8x16x128xf32, #tpu.memory_space<vmem>>, vector<1x16x128xf32>,
    %61 = arith.mulf %33, %55 : vector<16x128xf32>
    %62 = arith.subf %61, %48 : vector<16x128xf32>
    %63 = arith.mulf %62, %28 : vector<16x128xf32>
    %c4 = arith.constant 4 : index
    %64 = arith.index_cast %3 : i32 to index
    %c0_15 = arith.constant 0 : index
    %65 = vector.load %arg2[%c4, %64, %c0_15] : memref<8x16x128xf32, #tpu.memory_space<vmem>>, vector<1x16x128xf32>
    %66 = vector.shape_cast %65 : vector<1x16x128xf32> to vector<16x128xf32>
    %67 = vector.shape_cast %63 : vector<16x128xf32> to vector<1x16x128xf32>
    tpu.vector_store %arg2[%c4, %64, %c0_15], %67 {strides = array<i32>} : memref<8x16x128xf32, #tpu.memory_space<vmem>>, vector<1x16x128xf32>,
    %68 = arith.mulf %33, %62 : vector<16x128xf32>
    %69 = arith.subf %68, %55 : vector<16x128xf32>
    %70 = arith.mulf %69, %28 : vector<16x128xf32>
    %c5 = arith.constant 5 : index
    %71 = arith.index_cast %3 : i32 to index
    %c0_16 = arith.constant 0 : index
    %72 = vector.load %arg2[%c5, %71, %c0_16] : memref<8x16x128xf32, #tpu.memory_space<vmem>>, vector<1x16x128xf32>
    %73 = vector.shape_cast %72 : vector<1x16x128xf32> to vector<16x128xf32>
    %74 = vector.shape_cast %70 : vector<16x128xf32> to vector<1x16x128xf32>
    tpu.vector_store %arg2[%c5, %71, %c0_16], %74 {strides = array<i32>} : memref<8x16x128xf32, #tpu.memory_space<vmem>>, vector<1x16x128xf32>,
    %75 = arith.mulf %33, %69 : vector<16x128xf32>
    %76 = arith.subf %75, %62 : vector<16x128xf32>
    %77 = arith.mulf %76, %28 : vector<16x128xf32>
    %c6 = arith.constant 6 : index
    %78 = arith.index_cast %3 : i32 to index
    %c0_17 = arith.constant 0 : index
    %79 = vector.load %arg2[%c6, %78, %c0_17] : memref<8x16x128xf32, #tpu.memory_space<vmem>>, vector<1x16x128xf32>
    %80 = vector.shape_cast %79 : vector<1x16x128xf32> to vector<16x128xf32>
    %81 = vector.shape_cast %77 : vector<16x128xf32> to vector<1x16x128xf32>
    tpu.vector_store %arg2[%c6, %78, %c0_17], %81 {strides = array<i32>} : memref<8x16x128xf32, #tpu.memory_space<vmem>>, vector<1x16x128xf32>,
    %82 = arith.mulf %33, %76 : vector<16x128xf32>
    %83 = arith.subf %82, %69 : vector<16x128xf32>
    %84 = arith.mulf %83, %28 : vector<16x128xf32>
    %c7 = arith.constant 7 : index
    %85 = arith.index_cast %3 : i32 to index
    %c0_18 = arith.constant 0 : index
    %86 = vector.load %arg2[%c7, %85, %c0_18] : memref<8x16x128xf32, #tpu.memory_space<vmem>>, vector<1x16x128xf32>
    %87 = vector.shape_cast %86 : vector<1x16x128xf32> to vector<16x128xf32>
    %88 = vector.shape_cast %84 : vector<16x128xf32> to vector<1x16x128xf32>
    tpu.vector_store %arg2[%c7, %85, %c0_18], %88 {strides = array<i32>} : memref<8x16x128xf32, #tpu.memory_space<vmem>>, vector<1x16x128xf32>,
    %c1_i32_19 = arith.constant 1 : i32
    return
  }
  func.func @transform_0(%arg0: i32) -> (i32, i32) {
    %c0_i32 = arith.constant 0 : i32
    %c0_i32_0 = arith.constant 0 : i32
    return %arg0, %c0_i32 : i32, i32
  }
  func.func @transform_1(%arg0: i32) -> (i32, i32, i32) {
    %c0_i32 = arith.constant 0 : i32
    %c0_i32_0 = arith.constant 0 : i32
    %c0_i32_1 = arith.constant 0 : i32
    return %c0_i32, %arg0, %c0_i32_0 : i32, i32, i32
  }
}

</mosaic_0001>

<bundles_post_ra>
// kernel: tpu_custom_call.1
= control target key start
LH: loop header
LB: loop body
LE: loop exit
PB: predicated region body
PF: predicated region fallthrough
CT: control target
= control target key end

     0   :  { %6 = vsyncpa [#allocation3], 0  ;;  %s1283_s0 = inlined_call_operand.hbm [shape: f32[32,128], index: 0, kind: input, shape index: {}]   ;;  %s1284_s1 = inlined_call_operand.hbm [shape: f32[8,32,128], index: 1, kind: output, shape index: {}]  }
   0x1   :  { %8 = vsyncpa [#allocation3 + $0x1], 0 }
   0x2   :  { %9 = vsyncpa [#allocation4], 0 }
   0x3   :  { %11 = vsyncpa [#allocation4 + $0x1], 0  ;;  %s1003_s6 = smov 0   ;;  %s1005_s7 = smov 0  }
   0x4   :  { %s1007_s8 = smov 0   ;;  %s1009_s9 = smov 0  }
   0x5 LB: > { %s1024_s10 = sadd.s32 4294967295, %s975_s9   ;;  %s776_s11 = sadd.s32 4294967294, %s975_s9   ;;  %s975_s9 = sphi %s1009_s9, %s1303_s9   ;;  %s971_s8 = sphi %s1007_s8, %s1302_s8   ;;  %s967_s7 = sphi %s1005_s7, %s1301_s7   ;;  %s963_s6 = sphi %s1003_s6, %s1300_s6  }
   0x6   : > { %s1028_s12 = sadd.s32 1, %s975_s9   ;;  %s24_s13 = sadd.s32 1, %s971_s8 }
   0x7   : > { %s21_s14 = ssub.s32 %s975_s9, %s1028_s12  ;;  %p31_p0 = scmp.ne.s32.totalorder %s971_s8, %s967_s7 }
   0x8   : > { %p22_p1 = scmp.eq.s32.totalorder %s21_s14, 0  ;;  %p32_p2 = scmp.eq.s32.totalorder %s975_s9, 0 }
   0x9   : > { %p37_p3 = scmp.ne.s32.totalorder %s967_s7, %s963_s6  ;;  %p38_p4 = scmp.eq.s32.totalorder %s1024_s10, 0 }
   0xa   : > { %s1040_s15 = scalar_select %p22_p1, %s971_s8, %s24_s13  }
   0xb   : > { %p1042_p5 = por %p32_p2, %p31_p0  ;;  %p1046_p6 = por %p38_p4, %p37_p3 }
   0xc   : > { %p61_p7 = scmp.eq.s32.totalorder %s1024_s10, 1  ;;  %p67_p8 = scmp.eq.s32.totalorder %s776_s11, 1 }
   0xd   : > { %s1288_s17 = scalar_select %p1046_p6, 1, 0 }
   0xe   : > { %p848_p10 = scmp.lt.s32.totalorder %s975_s9, 2  ;;  %p1053_p11 = por %p61_p7, %p31_p0 }
   0xf   : > { %p1057_p12 = por %p67_p8, %p37_p3  ;;  %s87_s20 = sand.u32 1, %s971_s8  }
  0x10   : > { %s1289_s18 = scalar_select %p1053_p11, 1, 0 }
  0x11   : > { %s1290_s19 = scalar_select %p1057_p12, 1, 0 }
  0x12   : > { %s820_s21 = sshll.u32 %s975_s9, 8  ;;  %s779_s22 = sshll.u32 %s87_s20, 4 }
  0x13   : > { %s1066_s25 = scalar_lea.hbm %s1283_s0, %s820_s21  ;;  %s91_s26 = scalar_lea.vmem [#allocation2], %s779_s22 }
  0x14   : > { %s98_s27 = sshll.u32 %s91_s26, 4  ;;  %p1070_p13 = pnand %p848_p10, %p1042_p5  ;;  %s1074_s27 = int_to_ptr.vmem [resolvable:$true] %s98_s27 }
  0x15   : > { %s1076_s29 = scalar_lea.sflag [#allocation3], %s87_s20  ;;  %s909_s30 = scalar_lea.hbm %s1066_s25, 256 }
  0x16   : > { %p910_p0 = scmp.ne.s32.totalorder %s1066_s25, %s909_s30  ;;  %p911_p1 = pneg %p1070_p13 }
  0x17   : > { %s914_s4 = scalar_lea.hbm %s1283_s0, 512  ;;  %p915_p4 = scmp.lt.s32.totalorder %s1066_s25, %s1283_s0 }
  0x18   : > { %p912_p2 = pnand %p911_p1, %p910_p0  ;;  %p916_p5 = scmp.lt.s32.totalorder %s914_s4, %s909_s30 }
  0x1a   : > { %p913_p3 = pneg %p912_p2  ;;  %p917_p7 = por %p916_p5, %p915_p4 }
  0x1c   : > { %p918_p8 = pnand %p917_p7, %p913_p3 }
  0x1e   : > { %921 = shalt.err (!%p918_p8)
}
  0x1f   : > { %s922_s13 = scalar_lea.vmem %s1074_s27, 256  ;;  %s977_s14 = smov [#allocation2]  }
  0x20   : > { %p923_p10 = scmp.ne.s32.totalorder %s1074_s27, %s922_s13  ;;  %s927_s16 = sshll.u32 %s977_s14, 4  ;;  %s928_s16 = int_to_ptr.vmem [resolvable:$false] %s927_s16 }
  0x21   : > { %s929_s20 = scalar_lea.vmem %s928_s16, 512  ;;  %p930_p2 = scmp.lt.s32.totalorder %s1074_s27, %s928_s16 }
  0x22   : > { %p925_p9 = pnand %p923_p10, %p911_p1  ;;  %p931_p12 = scmp.lt.s32.totalorder %s929_s20, %s922_s13 }
  0x24   : > { %p926_p0 = pneg %p925_p9  ;;  %p932_p11 = por %p931_p12, %p930_p2 }
  0x26   : > { %p933_p6 = pnand %p932_p11, %p926_p0 }
  0x28   : > { %936 = shalt.err (!%p933_p6)
}
  0x29   : > { %s978_s21 = smov 128   ;;  %s979_s22 = smov 8  }
  0x2a   : > { %843 = dma.hbm_to_vmem [thread:$0]  (!%p1070_p13), %s1066_s25, 256, %s1074_s27, %s1076_s29, %s978_s21, %s978_s21, %s979_s22  }
  0x2b   : > { %p782_p9 = scmp.ge.s32.totalorder %s975_s9, 1  ;;  %p106_p1 = scmp.lt.s32.totalorder %s975_s9, 3 }
  0x2d   : > { %p107_p3 = pnand %p782_p9, %p106_p1 }
  0x2e   : > { %s1100_s23 = sand.u32 (!%p107_p3), 1, %s967_s7   ;;  %p1292_p6 = scmp.ne.s32.totalorder (!%p107_p3), %s1288_s17, 0 }
  0x2f   : > { %110 = sbr.rel (%p107_p3) target bundleno = 190 (0xbe), region = 24  ;;  %s783_s24 = sshll.u32 (!%p107_p3), %s1100_s23, 4 }
  0x30   : > { %s113_s26 = scalar_lea.sflag (!%p107_p3), [#allocation3], %s1100_s23  ;;  %s116_s30 = scalar_lea.vmem (!%p107_p3), [#allocation2], %s783_s24 }
  0x34   : > { %954 = dma.done.wait (%p1292_p6), %s113_s26, 256  }
  0x35   : > { %956 = vsyncadd (%p1292_p6), %s113_s26, 4294967040  ;;  %v1108_v0 = vld [vmem:[%s116_s30] sm:$0xff]  ;;  %v1113_v2 = vld [vmem:[%s116_s30 + $0x8] sm:$0xff]  ;;  %v980_v18 = vmov 683565275   ;;  %s784_s17 = sshll.u32 %s1100_s23, 7 }
  0x36   : > { %v1111_v1 = vmul.f32 0.62831855, %v1108_v0  ;;  %v1118_v5 = vmul.f32 0.62831855, %v1113_v2  ;;  %v981_v20 = vmov 2475754826   ;;  %897 = vrcp.f32 %v1108_v0 }
  0x37   : > { %v982_v23 = vmov 2131351028   ;;  %v983_v25 = vmov 2102212464   ;;  %v984_v27 = vmov 920167782  }
  0x38   : > { %v174_v3 = vand.u32 2139095040, %v1111_v1  ;;  %v171_v4 = vand.u32 2147483647, %v1111_v1  ;;  %v278_v9 = vand.u32 2139095040, %v1118_v5  ;;  %v275_v22 = vand.u32 2147483647, %v1118_v5 }
  0x39   : > { %v985_v36 = vmov 1326507024   ;;  %vm173_vm13 = vcmp.lt.s32.totalorder %v1111_v1, 0  ;;  %s1212_s25 = scalar_lea.vmem [#allocation5], %s784_s17  ;;  %s660_s27 = scalar_lea.sflag [#allocation4], %s1100_s23 }
  0x3a   : > { %v175_v6 = vshrl.u32 %v174_v3, 23  ;;  %v178_v8 = vand.u32 8388607, %v171_v4  ;;  %v279_v11 = vshrl.u32 %v278_v9, 23  ;;  %v282_v40 = vand.u32 8388607, %v275_v22 }
  0x3b   : > { %vm1167_vm14 = vcmp.le.f32.partialorder %v171_v4, 0.7853982 }
  0x3c   : > { %v785_v7 = vadd.s32 4294967169, %v175_v6  ;;  %v179_v12 = vor.u32 8388608, %v178_v8  ;;  %v789_v15 = vadd.s32 4294967169, %v279_v11  ;;  %v283_v61 = vor.u32 8388608, %v282_v40 }
  0x3e   : > { %v181_v10 = vadd.s32 1, %v785_v7  ;;  %v219_v29 = vshll.u32 %v179_v12, 8  ;;  %v285_v33 = vadd.s32 1, %v789_v15  ;;  %v323_v15 = vshll.u32 %v283_v61, 8 }
  0x40   : > { %vm182_vm0 = vcmp.gt.s32.totalorder %v181_v10, 0  ;;  %vm286_vm5 = vcmp.gt.s32.totalorder %v285_v33, 0 }
  0x41   : > { %v183_v13 = vsel %vm182_vm0, %v181_v10, 0  ;;  %v287_v56 = vsel %vm286_vm5, %v285_v33, 0  ;;  %vm159_vm0 = vcmp.lt.f32.partialorder %v1108_v0, 5.0 }
  0x42   : > { %v185_v14 = vand.u32 31, %v183_v13  ;;  %v184_v16 = vshrl.u32 %v183_v13, 5  ;;  %v289_v62 = vand.u32 31, %v287_v56  ;;  %v288_v10 = vshrl.u32 %v287_v56, 5 }
  0x43   : > { %v139_v56 = vmul.f32 0.2, %v1108_v0 }
  0x44   : > { %v186_v17 = vsub.s32 32, %v185_v14  ;;  %v188_v19 = vshll.u32 %v980_v18, %v185_v14  ;;  %v191_v21 = vshll.u32 %v981_v20, %v185_v14  ;;  %v194_v24 = vshll.u32 %v982_v23, %v185_v14 }
  0x45   : > { %v197_v26 = vshll.u32 %v983_v25, %v185_v14  ;;  %v200_v28 = vshll.u32 %v984_v27, %v185_v14  ;;  %vm203_vm1 = vcmp.lt.s32.totalorder %v184_v16, 1  ;;  %vm206_vm2 = vcmp.lt.s32.totalorder %v184_v16, 4 }
  0x46   : > { %v187_v30 = vshrl.u32 %v980_v18, %v186_v17  ;;  %v189_v31 = vshrl.u32 %v981_v20, %v186_v17  ;;  %v192_v32 = vshrl.u32 %v982_v23, %v186_v17  ;;  %v195_v34 = vshrl.u32 %v983_v25, %v186_v17 }
  0x47   : > { %v198_v35 = vshrl.u32 %v984_v27, %v186_v17  ;;  %v201_v37 = vshrl.u32 %v985_v36, %v186_v17  ;;  %vm205_vm3 = vcmp.lt.s32.totalorder %v184_v16, 3  ;;  %vm204_vm4 = vcmp.lt.s32.totalorder %v184_v16, 2 }
  0x48   : > { %v190_v38 = vor.u32 %v189_v31, %v188_v19  ;;  %v193_v39 = vor.u32 %v192_v32, %v191_v21  ;;  %v196_v41 = vor.u32 %v195_v34, %v194_v24  ;;  %v290_v3 = vsub.s32 32, %v289_v62 }
  0x49   : > { %v199_v42 = vor.u32 %v198_v35, %v197_v26  ;;  %v202_v43 = vor.u32 %v201_v37, %v200_v28  ;;  %v292_v6 = vshll.u32 %v980_v18, %v289_v62  ;;  %v295_v7 = vshll.u32 %v981_v20, %v289_v62 }
  0x4a   : > { %v207_v44 = vsel %vm203_vm1, %v187_v30, %v190_v38  ;;  %v211_v45 = vsel %vm203_vm1, %v190_v38, %v193_v39  ;;  %v208_v46 = vsel %vm206_vm2, %v196_v41, 2102212464  ;;  %v215_v48 = vsel %vm203_vm1, %v193_v39, %v196_v41 }
  0x4b   : > { %v212_v47 = vsel %vm206_vm2, %v199_v42, 920167782  ;;  %v216_v49 = vsel %vm206_vm2, %v202_v43, 1326507024  ;;  %v209_v50 = vsel %vm205_vm3, %v193_v39, %v208_v46  ;;  %v298_v8 = vshll.u32 %v982_v23, %v289_v62 }
  0x4c   : > { %v213_v51 = vsel %vm205_vm3, %v196_v41, %v212_v47  ;;  %v217_v52 = vsel %vm205_vm3, %v199_v42, %v216_v49  ;;  %v210_v53 = vsel %vm204_vm4, %v207_v44, %v209_v50  ;;  %v301_v11 = vshll.u32 %v983_v25, %v289_v62 }
  0x4d   : > { %v214_v54 = vsel %vm204_vm4, %v211_v45, %v213_v51  ;;  %v218_v55 = vsel %vm204_vm4, %v215_v48, %v217_v52  ;;  %v226_v63 = vmul.u32 %v219_v29, %v210_v53  ;;  %v293_v12 = vshrl.u32 %v981_v20, %v290_v3 }
  0x4e   : > { %v1128_v57 = vmul.u32.u64.low %v219_v29, %v218_v55  ;;  %v1129_v58 = vmul.u32.u64.high %v219_v29, %v218_v55, %v1128_v57  ;;  %v1131_v59 = vmul.u32.u64.low %v219_v29, %v214_v54  ;;  %v1132_v60 = vmul.u32.u64.high %v219_v29, %v214_v54, %v1131_v59 }
  0x4f   : > { %v296_v13 = vshrl.u32 %v982_v23, %v290_v3  ;;  %v299_v14 = vshrl.u32 %v983_v25, %v290_v3  ;;  %v302_v17 = vshrl.u32 %v984_v27, %v290_v3  ;;  %v304_v19 = vshll.u32 %v984_v27, %v289_v62 }
  0x50   : > { %vm228_vm6 = vc.u32 %v1129_v58, %v1131_v59  ;;  %v229_v9 = vadd.s32 1, %v1132_v60  ;;  %v305_v21 = vshrl.u32 %v985_v36, %v290_v3  ;;  %v294_v26 = vor.u32 %v293_v12, %v292_v6 }
  0x51   : > { %v297_v28 = vor.u32 %v296_v13, %v295_v7  ;;  %v300_v29 = vor.u32 %v299_v14, %v298_v8  ;;  %v291_v30 = vshrl.u32 %v980_v18, %v290_v3  ;;  %v303_v31 = vor.u32 %v302_v17, %v301_v11 }
  0x52   : > { %v230_v16 = vsel %vm228_vm6, %v229_v9, %v1132_v60  ;;  %v306_v32 = vor.u32 %v305_v21, %v304_v19  ;;  %vm307_vm7 = vcmp.lt.s32.totalorder %v288_v10, 1  ;;  %vm308_vm8 = vcmp.lt.s32.totalorder %v288_v10, 2 }
  0x53   : > { %v231_v24 = vadd.s32 %v230_v16, %v226_v63  ;;  %vm309_vm9 = vcmp.lt.s32.totalorder %v288_v10, 3  ;;  %vm310_vm10 = vcmp.lt.s32.totalorder %v288_v10, 4  ;;  %v315_v23 = vsel %vm307_vm7, %v294_v26, %v297_v28 }
  0x54   : > { %v312_v20 = vsel %vm310_vm10, %v300_v29, 2102212464  ;;  %v316_v25 = vsel %vm310_vm10, %v303_v31, 920167782  ;;  %v319_v34 = vsel %vm307_vm7, %v297_v28, %v300_v29  ;;  %v320_v36 = vsel %vm310_vm10, %v306_v32, 1326507024 }
  0x55   : > { %v232_v33 = vadd.s32 536870912, %v231_v24  ;;  %v317_v27 = vsel %vm309_vm9, %v300_v29, %v316_v25  ;;  %v311_v37 = vsel %vm307_vm7, %v291_v30, %v294_v26  ;;  %v313_v38 = vsel %vm309_vm9, %v297_v28, %v312_v20 }
  0x56   : > { %v318_v39 = vsel %vm308_vm8, %v315_v23, %v317_v27  ;;  %v321_v18 = vsel %vm309_vm9, %v303_v31, %v320_v36  ;;  %v314_v47 = vsel %vm308_vm8, %v311_v37, %v313_v38  ;;  %v227_v60 = vadd.s32 %v1131_v59, %v1129_v58 }
  0x57   : > { %v1141_v35 = vshrl.u32 %v232_v33, 30  ;;  %v322_v41 = vsel %vm308_vm8, %v319_v34, %v321_v18  ;;  %v1149_v44 = vmul.u32.u64.low %v323_v15, %v318_v39  ;;  %v1150_v45 = vmul.u32.u64.high %v323_v15, %v318_v39, %v1149_v44 }
  0x58   : > { %v1146_v42 = vmul.u32.u64.low %v323_v15, %v322_v41  ;;  %v1147_v43 = vmul.u32.u64.high %v323_v15, %v322_v41, %v1146_v42  ;;  %v330_v49 = vmul.u32 %v323_v15, %v314_v47  ;;  %v147_v7 = vmul.f32 21.0, %v139_v56 }
  0x59   : > { %v234_v40 = vshll.u32 %v1141_v35, 30  ;;  %v333_v50 = vadd.s32 1, %v1150_v45  ;;  %v141_v14 = vmul.f32 %v139_v56, %v139_v56  ;;  %v140_v21 = vmul.f32 0.2, %v1113_v2 }
  0x5a   : > { %vm332_vm11 = vc.u32 %v1147_v43, %v1149_v44  ;;  %v149_v15 = vsub.f32 48.0, %v147_v7  ;;  %v257_v30 = vsub.s32 4, %v1141_v35  ;;  %v331_v34 = vadd.s32 %v1149_v44, %v1147_v43 }
  0x5b   : > { %v235_v46 = vsub.s32 %v231_v24, %v234_v40  ;;  %v334_v52 = vsel %vm332_vm11, %v333_v50, %v1150_v45  ;;  %v143_v24 = vmul.f32 %v141_v14, %v141_v14  ;;  %v148_v20 = vmul.f32 21.0, %v140_v21 }
  0x5c   : > { %v335_v54 = vadd.s32 %v334_v52, %v330_v49  ;;  %v151_v26 = vmul.f32 %v149_v15, %v139_v56  ;;  %v258_v36 = vsel %vm173_vm13, %v257_v30, %v1141_v35  ;;  %v142_v40 = vmul.f32 %v140_v21, %v140_v21 }
  0x5d   : > { %v237_v48 = vsub.s32 0, %v235_v46  ;;  %v145_v23 = vmul.f32 %v143_v24, %v141_v14  ;;  %v150_v41 = vsub.f32 48.0, %v148_v20  ;;  %v260_v45 = vsel %vm1167_vm14, 0, %v258_v36 }
  0x5e   : > { %v336_v57 = vadd.s32 536870912, %v335_v54  ;;  %v153_v25 = vsub.f32 28.0, %v151_v26  ;;  %v144_v47 = vmul.f32 %v142_v40, %v142_v40  ;;  %v264_v50 = vadd.s32 3, %v260_v45 }
  0x5f   : > { %v786_v51 = vmin.u32 %v237_v48, %v235_v46  ;;  %v152_v48 = vmul.f32 %v150_v41, %v140_v21  ;;  %vm277_vm1 = vcmp.lt.s32.totalorder %v1118_v5, 0  ;;  %vm1184_vm2 = vcmp.le.f32.partialorder %v275_v22, 0.7853982 }
  0x60   : > { %v1159_v62 = vshrl.u32 %v336_v57, 30  ;;  %v155_v42 = vmul.f32 %v153_v25, %v145_v23  ;;  %v265_v57 = vand.u32 3, %v264_v50  ;;  %vm263_vm3 = vweird.f32 %v1111_v1 }
  0x61   : > { %v239_v53 = vclz %v786_v51  ;;  %vm160_vm10 = vcmp.lt.f32.partialorder %v1113_v2, 5.0 }
  0x62   : > { %v338_v8 = vshll.u32 %v1159_v62, 30  ;;  %v157_v49 = vsub.f32 1.0, %v155_v42  ;;  %vm270_vm4 = vcmp.eq.s32.totalorder %v265_v57, 2  ;;  %vm267_vm7 = vcmp.eq.s32.totalorder %v265_v57, 0 }
  0x63   : > { %v787_v55 = vadd.s32 4294967294, %v239_v53  ;;  %vm266_vm8 = vcmp.lt.s32.totalorder %v265_v57, 2 }
  0x64   : > { %v339_v11 = vsub.s32 %v335_v54, %v338_v8  ;;  %v146_v54 = vmul.f32 %v144_v47, %v142_v40  ;;  %v161_v56 = vsel %vm159_vm0, %v157_v49, 0.0 }
  0x65   : > { %vm788_vm12 = vcmp.lt.s32.totalorder %v787_v55, 0  ;;  %v163_v0 = vmul.f32 0.6324555, %v161_v56 }
  0x66   : > { %v242_v61 = vsel %vm788_vm12, 0, %v787_v55  ;;  %v341_v16 = vsub.s32 0, %v339_v11  ;;  %v154_v55 = vsub.f32 28.0, %v152_v48 }
  0x67   : > { %v243_v63 = vsub.s32 32, %v242_v61  ;;  %v244_v3 = vshll.u32 %v235_v46, %v242_v61  ;;  %v247_v6 = vsub.s32 4294967266, %v242_v61 }
  0x68   : > { %v790_v59 = vmin.u32 %v341_v16, %v339_v11  ;;  %v156_v8 = vmul.f32 %v154_v55, %v146_v54 }
  0x69   : > { %v245_v9 = vshrl.u32 %v227_v60, %v243_v63  ;;  %v248_v10 = vadd.s32 127, %v247_v6  ;;  %v472_v60 = vand.u32 3, %v260_v45  ;;  %v361_v63 = vsub.s32 4, %v1159_v62 }
  0x6a   : > { %v343_v28 = vclz %v790_v59 }
  0x6b   : > { %v246_v12 = vor.u32 %v245_v9, %v244_v3  ;;  %v249_v13 = vshll.u32 %v248_v10, 23  ;;  %v898_v3 = vpop.eup %897  ;;  %vm474_vm5 = vcmp.eq.s32.totalorder %v472_v60, 0  ;;  %vm477_vm6 = vcmp.eq.s32.totalorder %v472_v60, 2 }
  0x6c   : > { %v791_v31 = vadd.s32 4294967294, %v343_v28  ;;  %vm473_vm9 = vcmp.lt.s32.totalorder %v472_v60, 2  ;;  %v1199_v15 = vmul.f32 %v898_v3, %v163_v0  ;;  %v158_v28 = vsub.f32 1.0, %v156_v8 }
  0x6d   : > { %v250_v17 = vor.u32 4788187, %v249_v13  ;;  %v253_v58 = vcvt.s32.f32 %v246_v12  ;;  %v362_v12 = vsel %vm277_vm1, %v361_v63, %v1159_v62 }
  0x6e   : > { %vm792_vm15 = vcmp.lt.s32.totalorder %v791_v31, 0  ;;  %v364_v62 = vsel %vm1184_vm2, 0, %v362_v12 }
  0x6f   : > { %v251_v19 = vand.u32 2147483647, %v250_v17  ;;  %v346_v37 = vsel %vm792_vm15, 0, %v791_v31  ;;  %v368_v31 = vadd.s32 3, %v364_v62  ;;  %v575_v23 = vand.u32 3, %v364_v62 }
  0x70   : > { %v347_v38 = vsub.s32 32, %v346_v37  ;;  %v348_v39 = vshll.u32 %v339_v11, %v346_v37  ;;  %v351_v18 = vsub.s32 4294967266, %v346_v37 }
  0x71   : > { %v254_v29 = vmul.f32 %v253_v58, %v251_v19  ;;  %v369_v20 = vand.u32 3, %v368_v31  ;;  %vm580_vm12 = vcmp.eq.s32.totalorder %v575_v23, 2  ;;  %vm576_vm0 = vcmp.lt.s32.totalorder %v575_v23, 2 }
  0x72   : > { %v349_v43 = vshrl.u32 %v331_v34, %v347_v38  ;;  %v352_v44 = vadd.s32 127, %v351_v18 }
  0x73   : > { %v255_v33 = vxor.u32 2147483648, %v254_v29  ;;  %vm374_vm11 = vcmp.eq.s32.totalorder %v369_v20, 2  ;;  %vm370_vm15 = vcmp.lt.s32.totalorder %v369_v20, 2 }
  0x74   : > { %v350_v46 = vor.u32 %v349_v43, %v348_v39  ;;  %v353_v35 = vshll.u32 %v352_v44, 23 }
  0x75   : > { %v256_v27 = vsel %vm173_vm13, %v255_v33, %v254_v29  ;;  %v162_v33 = vsel %vm160_vm10, %v158_v28, 0.0  ;;  %vm371_vm13 = vcmp.eq.s32.totalorder %v369_v20, 0 }
  0x76   : > { %v259_v4 = vsel %vm1167_vm14, %v1111_v1, %v256_v27  ;;  %v354_v51 = vor.u32 4788187, %v353_v35  ;;  %v357_v52 = vcvt.s32.f32 %v350_v46  ;;  %vm577_vm14 = vcmp.eq.s32.totalorder %v575_v23, 0 }
  0x77   : > { %899 = vcosq.f32 %v259_v4 }
  0x78   : > { %901 = vsinq.f32 %v259_v4  ;;  %v355_v53 = vand.u32 2147483647, %v354_v51 }
  0x79   : > { %903 = vrcp.f32 %v1113_v2  ;;  %v164_v2 = vmul.f32 0.6324555, %v162_v33 }
  0x7a   : > { %v358_v61 = vmul.f32 %v357_v52, %v355_v53 }
  0x7c   : > { %v359_v7 = vxor.u32 2147483648, %v358_v61 }
  0x7e   : > { %v360_v10 = vsel %vm277_vm1, %v359_v7, %v358_v61  ;;  %vm367_vm1 = vweird.f32 %v1118_v5 }
  0x7f   : > { %v363_v13 = vsel %vm1184_vm2, %v1118_v5, %v360_v10 }
  0x80   : > { %905 = vcosq.f32 %v363_v13 }
  0x81   : > { %907 = vsinq.f32 %v363_v13 }
  0x84   : > { %v900_v9 = vpop.eup %899 }
  0x85   : > { %v902_v11 = vpop.eup %901  ;;  %v271_v22 = vxor.u32 2147483648, %v900_v9 }
  0x86   : > { %v268_v14 = vxor.u32 2147483648, %v902_v11  ;;  %v904_v34 = vpop.eup %903 }
  0x87   : > { %v272_v16 = vsel %vm270_vm4, %v271_v22, %v902_v11  ;;  %v479_v17 = vsel %vm477_vm6, %v271_v22, %v902_v11  ;;  %v168_v41 = vmul.f32 %v904_v34, %v164_v2 }
  0x88   : > { %v269_v58 = vsel %vm267_vm7, %v900_v9, %v268_v14  ;;  %v476_v59 = vsel %vm474_vm5, %v900_v9, %v268_v14 }
  0x89   : > { %v273_v19 = vsel %vm266_vm8, %v269_v58, %v272_v16  ;;  %v480_v21 = vsel %vm473_vm9, %v476_v59, %v479_v17 }
  0x8a   : > { %v274_v24 = vsel %vm263_vm3, nan, %v273_v19  ;;  %v481_v26 = vsel %vm263_vm3, nan, %v480_v21 }
  0x8b   : > { %v1208_v29 = vadd.f32 %v481_v26, %v481_v26  ;;  %v587_v30 = vmul.f32 %v274_v24, %v1199_v15 }
  0x8d   : > { %589 = vst [vmem:[%s1212_s25] sm:$0xff] %v587_v30  ;;  %v591_v32 = vmul.f32 %v1208_v29, %v274_v24  ;;  %v906_v36 = vpop.eup %905 }
  0x8e   : > { %v908_v38 = vpop.eup %907  ;;  %v375_v39 = vxor.u32 2147483648, %v906_v36 }
  0x8f   : > { %v593_v1 = vmul.f32 %v591_v32, %v1199_v15  ;;  %v599_v25 = vmul.f32 %v591_v32, %v1208_v29  ;;  %v372_v18 = vxor.u32 2147483648, %v908_v38 }
  0x90   : > { %v376_v42 = vsel %vm374_vm11, %v375_v39, %v908_v38  ;;  %v582_v43 = vsel %vm580_vm12, %v375_v39, %v908_v38 }
  0x91   : > { %801 = vst [vmem:[%s1212_s25 + $0x10] sm:$0xff] %v593_v1  ;;  %v601_v27 = vsub.f32 %v599_v25, %v274_v24  ;;  %v373_v44 = vsel %vm371_vm13, %v906_v36, %v372_v18  ;;  %v579_v45 = vsel %vm577_vm14, %v906_v36, %v372_v18 }
  0x92   : > { %v377_v47 = vsel %vm370_vm15, %v373_v44, %v376_v42  ;;  %v583_v48 = vsel %vm576_vm0, %v579_v45, %v582_v43 }
  0x93   : > { %v603_v37 = vmul.f32 %v601_v27, %v1199_v15  ;;  %v609_v4 = vmul.f32 %v601_v27, %v1208_v29  ;;  %v378_v49 = vsel %vm367_vm1, nan, %v377_v47  ;;  %v584_v50 = vsel %vm367_vm1, nan, %v583_v48 }
  0x94   : > { %v586_v52 = vadd.f32 %v584_v50, %v584_v50  ;;  %v588_v5 = vmul.f32 %v378_v49, %v168_v41 }
  0x95   : > { %803 = vst [vmem:[%s1212_s25 + $0x20] sm:$0xff] %v603_v37  ;;  %v611_v40 = vsub.f32 %v609_v4, %v591_v32 }
  0x96   : > { %590 = vst [vmem:[%s1212_s25 + $0x8] sm:$0xff] %v588_v5  ;;  %v592_v55 = vmul.f32 %v586_v52, %v378_v49 }
  0x97   : > { %v613_v46 = vmul.f32 %v611_v40, %v1199_v15  ;;  %v619_v35 = vmul.f32 %v611_v40, %v1208_v29 }
  0x98   : > { %v594_v57 = vmul.f32 %v592_v55, %v168_v41  ;;  %v600_v60 = vmul.f32 %v592_v55, %v586_v52 }
  0x99   : > { %805 = vst [vmem:[%s1212_s25 + $0x30] sm:$0xff] %v613_v46  ;;  %v621_v51 = vsub.f32 %v619_v35, %v601_v27 }
  0x9a   : > { %802 = vst [vmem:[%s1212_s25 + $0x18] sm:$0xff] %v594_v57  ;;  %v602_v3 = vsub.f32 %v600_v60, %v378_v49 }
  0x9b   : > { %v623_v53 = vmul.f32 %v621_v51, %v1199_v15  ;;  %v629_v54 = vmul.f32 %v621_v51, %v1208_v29 }
  0x9c   : > { %v604_v7 = vmul.f32 %v602_v3, %v168_v41  ;;  %v610_v0 = vmul.f32 %v602_v3, %v586_v52 }
  0x9d   : > { %807 = vst [vmem:[%s1212_s25 + $0x40] sm:$0xff] %v623_v53  ;;  %v631_v56 = vsub.f32 %v629_v54, %v611_v40 }
  0x9e   : > { %804 = vst [vmem:[%s1212_s25 + $0x28] sm:$0xff] %v604_v7  ;;  %v612_v10 = vsub.f32 %v610_v0, %v592_v55 }
  0x9f   : > { %v633_v61 = vmul.f32 %v631_v56, %v1199_v15  ;;  %v639_v63 = vmul.f32 %v631_v56, %v1208_v29 }
  0xa0   : > { %v614_v22 = vmul.f32 %v612_v10, %v168_v41  ;;  %v620_v12 = vmul.f32 %v612_v10, %v586_v52 }
  0xa1   : > { %809 = vst [vmem:[%s1212_s25 + $0x50] sm:$0xff] %v633_v61  ;;  %v641_v6 = vsub.f32 %v639_v63, %v621_v51 }
  0xa2   : > { %806 = vst [vmem:[%s1212_s25 + $0x38] sm:$0xff] %v614_v22  ;;  %v622_v14 = vsub.f32 %v620_v12, %v602_v3 }
  0xa3   : > { %v643_v8 = vmul.f32 %v641_v6, %v1199_v15  ;;  %v649_v9 = vmul.f32 %v641_v6, %v1208_v29 }
  0xa4   : > { %v624_v16 = vmul.f32 %v622_v14, %v168_v41  ;;  %v630_v17 = vmul.f32 %v622_v14, %v586_v52 }
  0xa5   : > { %811 = vst [vmem:[%s1212_s25 + $0x60] sm:$0xff] %v643_v8  ;;  %v651_v11 = vsub.f32 %v649_v9, %v631_v56 }
  0xa6   : > { %808 = vst [vmem:[%s1212_s25 + $0x48] sm:$0xff] %v624_v16  ;;  %v632_v58 = vsub.f32 %v630_v17, %v612_v10 }
  0xa7   : > { %v653_v13 = vmul.f32 %v651_v11, %v1199_v15 }
  0xa8   : > { %v634_v59 = vmul.f32 %v632_v58, %v168_v41  ;;  %v640_v62 = vmul.f32 %v632_v58, %v586_v52 }
  0xa9   : > { %813 = vst [vmem:[%s1212_s25 + $0x70] sm:$0xff] %v653_v13 }
  0xaa   : > { %810 = vst [vmem:[%s1212_s25 + $0x58] sm:$0xff] %v634_v59  ;;  %v642_v19 = vsub.f32 %v640_v62, %v622_v14 }
  0xac   : > { %v644_v21 = vmul.f32 %v642_v19, %v168_v41  ;;  %v650_v24 = vmul.f32 %v642_v19, %v586_v52 }
  0xae   : > { %812 = vst [vmem:[%s1212_s25 + $0x68] sm:$0xff] %v644_v21  ;;  %v652_v26 = vsub.f32 %v650_v24, %v632_v58 }
  0xb0   : > { %v654_v28 = vmul.f32 %v652_v26, %v168_v41 }
  0xb2   : > { %814 = vst [vmem:[%s1212_s25 + $0x78] sm:$0xff] %v654_v28 }
  0xb3   : > { %s821_s28 = sshll.u32 %s1024_s10, 8  ;;  %s683_s29 = sshll.u32 %s1212_s25, 4  ;;  %s684_s29 = int_to_ptr.vmem [resolvable:$true] %s683_s29 }
  0xb4   : > { %s672_s4 = scalar_lea.hbm %s1284_s1, %s821_s28  ;;  %s986_s5 = smov 256  }
  0xb5   : > { %p1297_p11 = scmp.ne.s32.totalorder %s1289_s18, 0  ;;  %s987_s11 = smov 512  }
  0xb6   : > { %s988_s13 = smov 2   ;;  %s989_s14 = smov 128  }
  0xb7   : > { %832 = sst [smem:[#allocation7]] (%p1297_p11), %s986_s5  ;;  %s990_s10 = smov 8  }
  0xb8   : > { %833 = sst [smem:[#allocation7 + $0x1]] (%p1297_p11), %s987_s11  ;;  %s991_s16 = smov 131072  }
  0xb9   : > { %834 = sst [smem:[#allocation7 + $0x2]] (%p1297_p11), %s988_s13  ;;  %s992_s20 = smov 0  }
  0xba   : > { %835 = sst [smem:[#allocation7 + $0x3]] (%p1297_p11), %s989_s14 }
  0xbb   : > { %836 = sst [smem:[#allocation7 + $0x4]] (%p1297_p11), %s989_s14 }
  0xbc   : > { %837 = sst [smem:[#allocation7 + $0x5]] (%p1297_p11), %s990_s10 }
  0xbd   : > { %838 = dma.general (%p1297_p11), %s684_s29, 2048, %s672_s4, %s660_s27, %s991_s16, [#allocation7], %s992_s20, 0  }
  0xbe PF: > { %s711_s21 = sand.u32 1, %s963_s6   ;;  %p1298_p12 = scmp.ne.s32.totalorder %s1290_s19, 0 }
  0xbf   : > { %p1299_p13 = scmp.ge.s32.totalorder %s975_s9, 2  ;;  %s712_s22 = scalar_lea.sflag [#allocation4], %s711_s21 }
  0xc1   : > { %p845_p4 = pnand %p1299_p13, %p1298_p12 }
  0xc3   : > { %p846_p5 = pneg %p845_p4 }
  0xc5   : > { %958 = dma.done.wait (%p846_p5), %s712_s22, 2048  }
  0xc6   : > { %960 = vsyncadd (%p846_p5), %s712_s22, 4294965248  ;;  %p14_p7 = scmp.ge.s32.totalorder %s1028_s12, 4   ;;  %s1300_s6 = smov %s967_s7 }
  0xc7   : > { %s1301_s7 = smov %s971_s8  ;;  %s1302_s8 = smov %s1040_s15 }
  0xc8   : > { %s1303_s9 = smov %s1028_s12  ;;  %16 = sbr.rel (!%p14_p7) target bundleno = 5 (0x5), region = 81 }
  0xcd   :  { %717 = vsyncpa [#allocation3], 1 }
  0xce   :  { %719 = vsyncpa [#allocation3 + $0x1], 1 }
  0xcf   :  { %720 = vsyncpa [#allocation4], 1 }
  0xd0   :  { %722 = vsyncpa [#allocation4 + $0x1], 1 }

</bundles_post_ra>
